<compile_context>
chip_gen: v5e
topology: v5e:2x2
jax: 0.10.0
libtpu: 0.0.40
codegen_flags: <defaults>
</compile_context>

<pallas_src>
import jax
import jax.numpy as jnp
from jax.experimental import pallas as pl
from jax.experimental.pallas import tpu as pltpu


# ---------------------------------------------------------------------------
# Pallas flash-attention kernel (online softmax over Lk tiles).
# ---------------------------------------------------------------------------
def _make_flash_kernel(inv_temperature, has_bias):
    def kernel(q_ref, k_ref, v_ref, *rest):
        if has_bias:
            bias_ref, out_ref, attn_ref, m_sc, l_sc, acc_sc = rest
        else:
            bias_ref = None
            out_ref, attn_ref, m_sc, l_sc, acc_sc = rest

        ki = pl.program_id(3)

        @pl.when(ki == 0)
        def _init():
            m_sc[...] = jnp.full(m_sc.shape, -jnp.inf, dtype=jnp.float32)
            l_sc[...] = jnp.zeros(l_sc.shape, dtype=jnp.float32)
            acc_sc[...] = jnp.zeros(acc_sc.shape, dtype=jnp.float32)

        # (Hb, Lq_t, Dk) x (Hb, Lk_t, Dk) -> (Hb, Lq_t, Lk_t); bf16 in, f32 acc.
        s = jnp.einsum("hqd,hkd->hqk", q_ref[...], k_ref[...],
                       preferred_element_type=jnp.float32)
        s = s * jnp.float32(inv_temperature)
        if has_bias:
            s = s + bias_ref[...].astype(jnp.float32)   # fused mask + attn_bias

        # Second module output: raw masked/biased (pre-softmax) scores.
        attn_ref[...] = s.astype(attn_ref.dtype)

        # Online softmax update.
        m_prev = m_sc[...]
        m_new = jnp.maximum(m_prev, jnp.max(s, axis=-1, keepdims=True))
        alpha = jnp.exp(m_prev - m_new)
        p = jnp.exp(s - m_new)
        l_sc[...] = alpha * l_sc[...] + jnp.sum(p, axis=-1, keepdims=True)
        acc_sc[...] = alpha * acc_sc[...] + jnp.einsum(
            "hqk,hkd->hqd", p.astype(v_ref.dtype), v_ref[...],
            preferred_element_type=jnp.float32)
        m_sc[...] = m_new

        # TODO(synk): nn.Dropout(0.1) on the attention weights is identity in
        # eval mode; training-mode dropout is not implemented here.

        @pl.when(ki == pl.num_programs(3) - 1)
        def _finalize():
            inv_l = pl.reciprocal(l_sc[...], approx=True)
            out_ref[...] = (acc_sc[...] * inv_l).astype(out_ref.dtype)

    return kernel


# ---------------------------------------------------------------------------
# Tiling helpers.
# ---------------------------------------------------------------------------
def _tile(dim, target, align):
    """Largest tile <= target that divides `dim` and is a multiple of `align`
    (falls back to the full dim, which always satisfies the layout rule)."""
    if dim <= target:
        return dim
    t = (target // align) * align
    while t >= align:
        if dim % t == 0:
            return t
        t -= align
    return dim


def _per_head_tile_bytes(lq_t, lk_t, dk, dv, has_bias):
    dbl = (lq_t * dk + lk_t * dk + lk_t * dv) * 2      # bf16 q / k / v tiles
    dbl += lq_t * dv * 4 + lq_t * lk_t * 4             # f32 out + attn tiles
    if has_bias:
        dbl += lq_t * lk_t * 4                         # fused additive-bias tile
    scratch = lq_t * (dv + 2) * 4                      # m, l, acc accumulators
    return 2 * dbl + scratch                           # double-buffered streams


# ---------------------------------------------------------------------------
# ScaledDotProductAttention.forward (eval mode) — Pallas wrapper.
# ---------------------------------------------------------------------------
def scaled_dot_product_attention(q, k, v, temperature, mask=None, attn_bias=None,
                                 *, block_q=256, block_k=512, head_block=None):
    """q: (B,H,Lq,Dk); k: (B,H,Lk,Dk); v: (B,H,Lk,Dv);
    mask / attn_bias: (B or 1, H or 1, Lq, Lk) or None.
    Returns (output (B,H,Lq,Dv) f32, attn (B,H,Lq,Lk) f32 pre-softmax scores)."""
    B, H, Lq, Dk = q.shape
    Lk = k.shape[2]
    Dv = v.shape[3]

    # Fuse mask + attn_bias into ONE additive f32 tensor (None => no bias input).
    add_bias = None
    if mask is not None:
        add_bias = jnp.where(mask == 0, jnp.float32(-1000000000.0), jnp.float32(0.0))
    if attn_bias is not None:
        ab = attn_bias.astype(jnp.float32)
        add_bias = ab if add_bias is None else add_bias + ab
    has_bias = add_bias is not None

    lq_t = _tile(Lq, block_q, 8)       # second-to-last dim: multiple of 8 (or full)
    lk_t = _tile(Lk, block_k, 128)     # last dim of scores tile: multiple of 128 (or full)
    nq, nk = Lq // lq_t, Lk // lk_t

    per_head = _per_head_tile_bytes(lq_t, lk_t, Dk, Dv, has_bias)
    if head_block is None:
        head_block = max(1, min(H, (24 * 1024 * 1024) // max(per_head, 1)))
        while H % head_block:
            head_block -= 1
    nh = H // head_block

    est = head_block * per_head + (4 << 20)
    vmem_limit = int(min(max(est, 32 * 1024 * 1024), 48 * 1024 * 1024))

    q_map = lambda b, h, qi, ki: (b, h, qi, 0)
    kv_map = lambda b, h, qi, ki: (b, h, ki, 0)

    in_specs = [
        pl.BlockSpec((None, head_block, lq_t, Dk), q_map),
        pl.BlockSpec((None, head_block, lk_t, Dk), kv_map),
        pl.BlockSpec((None, head_block, lk_t, Dv), kv_map),
    ]
    inputs = [q.astype(jnp.bfloat16), k.astype(jnp.bfloat16), v.astype(jnp.bfloat16)]

    if has_bias:
        bB, bH = add_bias.shape[0], add_bias.shape[1]
        if bB not in (1, B) or bH not in (1, H):
            add_bias = jnp.broadcast_to(add_bias, (B, H, Lq, Lk))
            bB, bH = B, H
        if bH == H:
            bias_hb = head_block
            bias_map = (lambda b, h, qi, ki: (b, h, qi, ki)) if bB == B else \
                       (lambda b, h, qi, ki: (0, h, qi, ki))
        else:                       # head-broadcast mask/bias: never materialized per head
            bias_hb = 1
            bias_map = (lambda b, h, qi, ki: (b, 0, qi, ki)) if bB == B else \
                       (lambda b, h, qi, ki: (0, 0, qi, ki))
        in_specs.append(pl.BlockSpec((None, bias_hb, lq_t, lk_t), bias_map))
        inputs.append(add_bias)

    out_specs = [
        pl.BlockSpec((None, head_block, lq_t, Dv), lambda b, h, qi, ki: (b, h, qi, 0)),
        pl.BlockSpec((None, head_block, lq_t, lk_t), lambda b, h, qi, ki: (b, h, qi, ki)),
    ]
    out_shape = (
        jax.ShapeDtypeStruct((B, H, Lq, Dv), jnp.float32),   # attention output
        jax.ShapeDtypeStruct((B, H, Lq, Lk), jnp.float32),   # pre-softmax scores
    )
    scratch_shapes = [
        pltpu.VMEM((head_block, lq_t, 1), jnp.float32),      # running max  m
        pltpu.VMEM((head_block, lq_t, 1), jnp.float32),      # running sum  l
        pltpu.VMEM((head_block, lq_t, Dv), jnp.float32),     # output accumulator
    ]

    kernel = _make_flash_kernel(1.0 / float(temperature), has_bias)

    return pl.pallas_call(
        kernel,
        out_shape=out_shape,
        grid_spec=pltpu.PrefetchScalarGridSpec(
            num_scalar_prefetch=0,
            grid=(B, nh, nq, nk),
            in_specs=in_specs,
            out_specs=out_specs,
            scratch_shapes=scratch_shapes,
        ),
        compiler_params=pltpu.CompilerParams(
            dimension_semantics=("parallel", "parallel", "parallel", "arbitrary"),
            vmem_limit_bytes=vmem_limit,
        ),
    )(*inputs)


# ---------------------------------------------------------------------------
# MultiHeadAttention.forward (eval mode).
# ---------------------------------------------------------------------------
def init_mha_params(key, n_head, d_model, d_k, d_v):
    ks = jax.random.split(key, 4)

    def linear(k, fan_in, fan_out):
        bound = fan_in ** -0.5
        return jax.random.uniform(k, (fan_in, fan_out), jnp.float32, -bound, bound)

    return {
        "w_q": linear(ks[0], d_model, n_head * d_k),
        "w_k": linear(ks[1], d_model, n_head * d_k),
        "w_v": linear(ks[2], d_model, n_head * d_v),
        "w_fc": linear(ks[3], n_head * d_v, d_model),
        "ln_gamma": jnp.ones((d_model,), jnp.float32),
        "ln_beta": jnp.zeros((d_model,), jnp.float32),
    }


def multi_head_attention(params, q, k, v, n_head, d_k, d_v, mask=None,
                         attn_bias=None, attention_fn=scaled_dot_product_attention):
    B, len_q, _ = q.shape
    len_k = k.shape[1]
    len_v = v.shape[1]
    residual = q

    # Pre-norm on q only (LayerNorm, eps=1e-6), as in the module.
    mu = jnp.mean(q, axis=-1, keepdims=True)
    var = jnp.mean(jnp.square(q - mu), axis=-1, keepdims=True)
    qn = (q - mu) / jnp.sqrt(var + 1e-6)
    qn = qn * params["ln_gamma"] + params["ln_beta"]

    # Linear (no bias) + ReLU projections; small GEMMs left to XLA.
    qp = jax.nn.relu(qn @ params["w_q"]).reshape(B, len_q, n_head, d_k)
    kp = jax.nn.relu(k @ params["w_k"]).reshape(B, len_k, n_head, d_k)
    vp = jax.nn.relu(v @ params["w_v"]).reshape(B, len_v, n_head, d_v)
    qh, kh, vh = (t.transpose(0, 2, 1, 3) for t in (qp, kp, vp))

    mask4 = mask[:, None] if mask is not None else None            # (B,1,Lq,Lk)
    bias4 = attn_bias[:, None] if attn_bias is not None else None  # (B,1,Lq,Lk)

    out, attn = attention_fn(qh, kh, vh, d_k ** 0.5, mask=mask4, attn_bias=bias4)

    o = out.transpose(0, 2, 1, 3).reshape(B, len_q, n_head * d_v)
    o = o @ params["w_fc"]
    # TODO(synk): output nn.Dropout(0.1) is identity in eval mode (not implemented).
    o = o + residual
    return o, attn


# ---------------------------------------------------------------------------
# Pure-JAX references.
# ---------------------------------------------------------------------------
def _sdpa_reference(q, k, v, temperature, mask=None, attn_bias=None):
    attn = jnp.einsum("bhqd,bhkd->bhqk", q / temperature, k)
    if mask is not None:
        attn = jnp.where(mask == 0, -1000000000.0, attn)
    if attn_bias is not None:
        attn = attn + attn_bias
    norm_attn = jax.nn.softmax(attn, axis=-1)
    output = jnp.einsum("bhqk,bhkd->bhqd", norm_attn, v)
    return output, attn


if __name__ == "__main__":
    root = jax.random.PRNGKey(0)
    keys = jax.random.split(root, 10)

    # ----- full MultiHeadAttention forward (Pallas attention core) -----
    B, L, d_model, n_head, d_k, d_v = 2, 8, 64, 4, 32, 32
    params = init_mha_params(keys[0], n_head, d_model, d_k, d_v)
    q_in = jax.random.normal(keys[1], (B, L, d_model), jnp.float32)
    k_in = jax.random.normal(keys[2], (B, L, d_model), jnp.float32)
    v_in = jax.random.normal(keys[3], (B, L, d_model), jnp.float32)
    mask = (jax.random.uniform(keys[4], (B, L, L)) > 0.2).astype(jnp.int32)
    attn_bias = 0.1 * jax.random.normal(keys[5], (B, L, L), jnp.float32)

    out, attn = multi_head_attention(params, q_in, k_in, v_in, n_head, d_k, d_v,
                                     mask=mask, attn_bias=attn_bias)
    jax.block_until_ready((out, attn))
    out_r, attn_r = multi_head_attention(params, q_in, k_in, v_in, n_head, d_k, d_v,
                                         mask=mask, attn_bias=attn_bias,
                                         attention_fn=_sdpa_reference)
    assert out.shape == (B, L, d_model) and attn.shape == (B, n_head, L, L)
    assert jnp.allclose(out, out_r, atol=5e-2, rtol=5e-2), "MHA output mismatch"
    # masked entries sit near -1e9; the rtol term absorbs the fused-mask delta there
    assert jnp.allclose(attn, attn_r, atol=5e-2, rtol=1e-4), "MHA attn mismatch"

    # ----- no-mask / no-bias path (specialized kernel without the bias input) -----
    out2, attn2 = multi_head_attention(params, q_in, k_in, v_in, n_head, d_k, d_v)
    jax.block_until_ready((out2, attn2))
    out2_r, attn2_r = multi_head_attention(params, q_in, k_in, v_in, n_head, d_k, d_v,
                                           attention_fn=_sdpa_reference)
    assert jnp.allclose(out2, out2_r, atol=5e-2, rtol=5e-2), "no-mask output mismatch"
    assert jnp.allclose(attn2, attn2_r, atol=5e-2, rtol=5e-2), "no-mask attn mismatch"

    # ----- direct tiled SDPA: multi-tile grid exercises the online softmax -----
    Bs, Hs, Ls, Ds = 2, 2, 256, 64
    qs = jax.random.normal(keys[6], (Bs, Hs, Ls, Ds), jnp.float32)
    ks_ = jax.random.normal(keys[7], (Bs, Hs, Ls, Ds), jnp.float32)
    vs = jax.random.normal(keys[8], (Bs, Hs, Ls, Ds), jnp.float32)
    ms = (jax.random.uniform(keys[9], (Bs, Hs, Ls, Ls)) > 0.2).astype(jnp.int32)
    out3, attn3 = scaled_dot_product_attention(qs, ks_, vs, Ds ** 0.5, mask=ms,
                                               block_q=128, block_k=128)
    jax.block_until_ready((out3, attn3))
    out3_r, attn3_r = _sdpa_reference(qs, ks_, vs, Ds ** 0.5, mask=ms)
    assert jnp.allclose(out3, out3_r, atol=5e-2, rtol=5e-2), "tiled output mismatch"
    assert jnp.allclose(attn3, attn3_r, atol=5e-2, rtol=1e-4), "tiled attn mismatch"

    print("KERNEL_OK")
</pallas_src>

<mosaic_0001>
module attributes {stable_mosaic.version = 11 : i64} {
  func.func @kernel(%arg0: i32, %arg1: i32, %arg2: i32, %arg3: i32, %arg4: memref<1x4x8x32xbf16, #tpu.memory_space<vmem>>, %arg5: memref<1x4x8x32xbf16, #tpu.memory_space<vmem>>, %arg6: memref<1x4x8x32xbf16, #tpu.memory_space<vmem>>, %arg7: memref<1x1x8x8xf32, #tpu.memory_space<vmem>>, %arg8: memref<1x4x8x32xf32, #tpu.memory_space<vmem>>, %arg9: memref<1x4x8x8xf32, #tpu.memory_space<vmem>>, %arg10: memref<4x8x1xf32, #tpu.memory_space<vmem>>, %arg11: memref<4x8x1xf32, #tpu.memory_space<vmem>>, %arg12: memref<4x8x32xf32, #tpu.memory_space<vmem>>) attributes {dimension_semantics = [#tpu.dimension_semantics<parallel>, #tpu.dimension_semantics<parallel>, #tpu.dimension_semantics<parallel>, #tpu.dimension_semantics<arbitrary>], iteration_bounds = array<i64: 2, 1, 1, 1>, scalar_prefetch = 0 : i64, scratch_operands = 3 : i64, tpu.core_type = #tpu.core_type<tc>, window_params = [{transform_indices = @transform_0, window_bounds = array<i64: 1, 4, 8, 32>}, {transform_indices = @transform_1, window_bounds = array<i64: 1, 4, 8, 32>}, {transform_indices = @transform_2, window_bounds = array<i64: 1, 4, 8, 32>}, {transform_indices = @transform_3, window_bounds = array<i64: 1, 1, 8, 8>}, {transform_indices = @transform_4, window_bounds = array<i64: 1, 4, 8, 32>}, {transform_indices = @transform_5, window_bounds = array<i64: 1, 4, 8, 8>}]} {
    %c0_i32 = arith.constant 0 : i32
    %0 = arith.cmpi eq, %arg3, %c0_i32 : i32
    %1 = arith.extui %0 : i1 to i32
    %c0_i32_0 = arith.constant 0 : i32
    %2 = arith.cmpi ne, %1, %c0_i32_0 : i32
    scf.if %2 {
      %cst_44 = arith.constant 0xFF800000 : f32
      %45 = vector.broadcast %cst_44 : f32 to vector<4x8x1xf32>
      %c0_45 = arith.constant 0 : index
      %c0_46 = arith.constant 0 : index
      %c0_47 = arith.constant 0 : index
      %46 = vector.load %arg10[%c0_45, %c0_46, %c0_47] : memref<4x8x1xf32, #tpu.memory_space<vmem>>, vector<4x8x1xf32>
      tpu.vector_store %arg10[%c0_45, %c0_46, %c0_47], %45 {strides = array<i32>} : memref<4x8x1xf32, #tpu.memory_space<vmem>>, vector<4x8x1xf32>,
      %cst_48 = arith.constant 0.000000e+00 : f32
      %47 = vector.broadcast %cst_48 : f32 to vector<4x8x1xf32>
      %c0_49 = arith.constant 0 : index
      %c0_50 = arith.constant 0 : index
      %c0_51 = arith.constant 0 : index
      %48 = vector.load %arg11[%c0_49, %c0_50, %c0_51] : memref<4x8x1xf32, #tpu.memory_space<vmem>>, vector<4x8x1xf32>
      tpu.vector_store %arg11[%c0_49, %c0_50, %c0_51], %47 {strides = array<i32>} : memref<4x8x1xf32, #tpu.memory_space<vmem>>, vector<4x8x1xf32>,
      %cst_52 = arith.constant 0.000000e+00 : f32
      %49 = vector.broadcast %cst_52 : f32 to vector<4x8x32xf32>
      %c0_53 = arith.constant 0 : index
      %c0_54 = arith.constant 0 : index
      %c0_55 = arith.constant 0 : index
      %50 = vector.load %arg12[%c0_53, %c0_54, %c0_55] : memref<4x8x32xf32, #tpu.memory_space<vmem>>, vector<4x8x32xf32>
      tpu.vector_store %arg12[%c0_53, %c0_54, %c0_55], %49 {strides = array<i32>} : memref<4x8x32xf32, #tpu.memory_space<vmem>>, vector<4x8x32xf32>,
    } else {
    }
    %c0 = arith.constant 0 : index
    %c0_1 = arith.constant 0 : index
    %c0_2 = arith.constant 0 : index
    %c0_3 = arith.constant 0 : index
    %3 = vector.load %arg4[%c0, %c0_1, %c0_2, %c0_3] : memref<1x4x8x32xbf16, #tpu.memory_space<vmem>>, vector<1x4x8x32xbf16>
    %4 = vector.shape_cast %3 : vector<1x4x8x32xbf16> to vector<4x8x32xbf16>
    %c0_4 = arith.constant 0 : index
    %c0_5 = arith.constant 0 : index
    %c0_6 = arith.constant 0 : index
    %c0_7 = arith.constant 0 : index
    %5 = vector.load %arg5[%c0_4, %c0_5, %c0_6, %c0_7] : memref<1x4x8x32xbf16, #tpu.memory_space<vmem>>, vector<1x4x8x32xbf16>
    %6 = vector.shape_cast %5 : vector<1x4x8x32xbf16> to vector<4x8x32xbf16>
    "tpu.trace_start"() <{level = 10 : i32, message = "hqd,hkd->hqk"}> : () -> ()
    %cst = arith.constant dense<0.000000e+00> : vector<4x8x8xf32>
    %7 = tpu.matmul %4, %6, %cst {dimension_numbers = #tpu.dot_dimension_numbers<[2], [2], [1], [1], [0, 0, 0, 1, 1, 1], [0], [0]>} : vector<4x8x32xbf16>, vector<4x8x32xbf16>, vector<4x8x8xf32> -> vector<4x8x8xf32>
    "tpu.trace_stop"() : () -> ()
    %cst_8 = arith.constant 0.176776692 : f32
    %8 = vector.broadcast %cst_8 : f32 to vector<4x8x8xf32>
    %9 = arith.mulf %7, %8 : vector<4x8x8xf32>
    %c0_9 = arith.constant 0 : index
    %c0_10 = arith.constant 0 : index
    %c0_11 = arith.constant 0 : index
    %c0_12 = arith.constant 0 : index
    %10 = vector.load %arg7[%c0_9, %c0_10, %c0_11, %c0_12] : memref<1x1x8x8xf32, #tpu.memory_space<vmem>>, vector<1x1x8x8xf32>
    %11 = vector.shape_cast %10 : vector<1x1x8x8xf32> to vector<1x8x8xf32>
    %12 = vector.broadcast %11 : vector<1x8x8xf32> to vector<4x8x8xf32>
    %13 = arith.addf %9, %12 : vector<4x8x8xf32>
    %c0_13 = arith.constant 0 : index
    %c0_14 = arith.constant 0 : index
    %c0_15 = arith.constant 0 : index
    %c0_16 = arith.constant 0 : index
    %14 = vector.load %arg9[%c0_13, %c0_14, %c0_15, %c0_16] : memref<1x4x8x8xf32, #tpu.memory_space<vmem>>, vector<1x4x8x8xf32>
    %15 = vector.shape_cast %14 : vector<1x4x8x8xf32> to vector<4x8x8xf32>
    %16 = vector.shape_cast %13 : vector<4x8x8xf32> to vector<1x4x8x8xf32>
    tpu.vector_store %arg9[%c0_13, %c0_14, %c0_15, %c0_16], %16 {strides = array<i32>} : memref<1x4x8x8xf32, #tpu.memory_space<vmem>>, vector<1x4x8x8xf32>,
    %c0_17 = arith.constant 0 : index
    %c0_18 = arith.constant 0 : index
    %c0_19 = arith.constant 0 : index
    %17 = vector.load %arg10[%c0_17, %c0_18, %c0_19] : memref<4x8x1xf32, #tpu.memory_space<vmem>>, vector<4x8x1xf32>
    %cst_20 = arith.constant dense<0xFF800000> : vector<4x8xf32>
    %18 = vector.multi_reduction <maximumf>, %13, %cst_20 [2] : vector<4x8x8xf32> to vector<4x8xf32>
    %19 = vector.shape_cast %18 : vector<4x8xf32> to vector<4x8x1xf32>
    %20 = arith.maximumf %17, %19 : vector<4x8x1xf32>
    %21 = arith.subf %17, %20 : vector<4x8x1xf32>
    %22 = math.exp %21 : vector<4x8x1xf32>
    %23 = vector.broadcast %20 : vector<4x8x1xf32> to vector<4x8x8xf32>
    %24 = arith.subf %13, %23 : vector<4x8x8xf32>
    %25 = math.exp %24 : vector<4x8x8xf32>
    %c0_21 = arith.constant 0 : index
    %c0_22 = arith.constant 0 : index
    %c0_23 = arith.constant 0 : index
    %26 = vector.load %arg11[%c0_21, %c0_22, %c0_23] : memref<4x8x1xf32, #tpu.memory_space<vmem>>, vector<4x8x1xf32>
    %27 = arith.mulf %22, %26 : vector<4x8x1xf32>
    %cst_24 = arith.constant dense<0.000000e+00> : vector<4x8xf32>
    %28 = vector.multi_reduction <add>, %25, %cst_24 [2] : vector<4x8x8xf32> to vector<4x8xf32>
    %29 = vector.shape_cast %28 : vector<4x8xf32> to vector<4x8x1xf32>
    %30 = arith.addf %27, %29 : vector<4x8x1xf32>
    %c0_25 = arith.constant 0 : index
    %c0_26 = arith.constant 0 : index
    %c0_27 = arith.constant 0 : index
    %31 = vector.load %arg11[%c0_25, %c0_26, %c0_27] : memref<4x8x1xf32, #tpu.memory_space<vmem>>, vector<4x8x1xf32>
    tpu.vector_store %arg11[%c0_25, %c0_26, %c0_27], %30 {strides = array<i32>} : memref<4x8x1xf32, #tpu.memory_space<vmem>>, vector<4x8x1xf32>,
    %c0_28 = arith.constant 0 : index
    %c0_29 = arith.constant 0 : index
    %c0_30 = arith.constant 0 : index
    %32 = vector.load %arg12[%c0_28, %c0_29, %c0_30] : memref<4x8x32xf32, #tpu.memory_space<vmem>>, vector<4x8x32xf32>
    %33 = vector.broadcast %22 : vector<4x8x1xf32> to vector<4x8x32xf32>
    %34 = arith.mulf %33, %32 : vector<4x8x32xf32>
    %35 = arith.truncf %25 : vector<4x8x8xf32> to vector<4x8x8xbf16>
    %c0_31 = arith.constant 0 : index
    %c0_32 = arith.constant 0 : index
    %c0_33 = arith.constant 0 : index
    %c0_34 = arith.constant 0 : index
    %36 = vector.load %arg6[%c0_31, %c0_32, %c0_33, %c0_34] : memref<1x4x8x32xbf16, #tpu.memory_space<vmem>>, vector<1x4x8x32xbf16>
    %37 = vector.shape_cast %36 : vector<1x4x8x32xbf16> to vector<4x8x32xbf16>
    "tpu.trace_start"() <{level = 10 : i32, message = "hqk,hkd->hqd"}> : () -> ()
    %cst_35 = arith.constant dense<0.000000e+00> : vector<4x8x32xf32>
    %38 = tpu.matmul %35, %37, %cst_35 {dimension_numbers = #tpu.dot_dimension_numbers<[2], [1], [1], [2], [0, 0, 0, 1, 1, 2], [0], [0]>} : vector<4x8x8xbf16>, vector<4x8x32xbf16>, vector<4x8x32xf32> -> vector<4x8x32xf32>
    "tpu.trace_stop"() : () -> ()
    %39 = arith.addf %34, %38 : vector<4x8x32xf32>
    %c0_36 = arith.constant 0 : index
    %c0_37 = arith.constant 0 : index
    %c0_38 = arith.constant 0 : index
    %40 = vector.load %arg12[%c0_36, %c0_37, %c0_38] : memref<4x8x32xf32, #tpu.memory_space<vmem>>, vector<4x8x32xf32>
    tpu.vector_store %arg12[%c0_36, %c0_37, %c0_38], %39 {strides = array<i32>} : memref<4x8x32xf32, #tpu.memory_space<vmem>>, vector<4x8x32xf32>,
    %c0_39 = arith.constant 0 : index
    %c0_40 = arith.constant 0 : index
    %c0_41 = arith.constant 0 : index
    %41 = vector.load %arg10[%c0_39, %c0_40, %c0_41] : memref<4x8x1xf32, #tpu.memory_space<vmem>>, vector<4x8x1xf32>
    tpu.vector_store %arg10[%c0_39, %c0_40, %c0_41], %20 {strides = array<i32>} : memref<4x8x1xf32, #tpu.memory_space<vmem>>, vector<4x8x1xf32>,
    %c0_i32_42 = arith.constant 0 : i32
    %42 = arith.cmpi eq, %arg3, %c0_i32_42 : i32
    %43 = arith.extui %42 : i1 to i32
    %c0_i32_43 = arith.constant 0 : i32
    %44 = arith.cmpi ne, %43, %c0_i32_43 : i32
    scf.if %44 {
      %c0_44 = arith.constant 0 : index
      %c0_45 = arith.constant 0 : index
      %c0_46 = arith.constant 0 : index
      %45 = vector.load %arg11[%c0_44, %c0_45, %c0_46] : memref<4x8x1xf32, #tpu.memory_space<vmem>>, vector<4x8x1xf32>
      %46 = tpu.reciprocal %45 {approx = true} : vector<4x8x1xf32> -> vector<4x8x1xf32>
      %c0_47 = arith.constant 0 : index
      %c0_48 = arith.constant 0 : index
      %c0_49 = arith.constant 0 : index
      %47 = vector.load %arg12[%c0_47, %c0_48, %c0_49] : memref<4x8x32xf32, #tpu.memory_space<vmem>>, vector<4x8x32xf32>
      %48 = vector.broadcast %46 : vector<4x8x1xf32> to vector<4x8x32xf32>
      %49 = arith.mulf %47, %48 : vector<4x8x32xf32>
      %c0_50 = arith.constant 0 : index
      %c0_51 = arith.constant 0 : index
      %c0_52 = arith.constant 0 : index
      %c0_53 = arith.constant 0 : index
      %50 = vector.load %arg8[%c0_50, %c0_51, %c0_52, %c0_53] : memref<1x4x8x32xf32, #tpu.memory_space<vmem>>, vector<1x4x8x32xf32>
      %51 = vector.shape_cast %50 : vector<1x4x8x32xf32> to vector<4x8x32xf32>
      %52 = vector.shape_cast %49 : vector<4x8x32xf32> to vector<1x4x8x32xf32>
      tpu.vector_store %arg8[%c0_50, %c0_51, %c0_52, %c0_53], %52 {strides = array<i32>} : memref<1x4x8x32xf32, #tpu.memory_space<vmem>>, vector<1x4x8x32xf32>,
    } else {
    }
    return
  }
  func.func @transform_0(%arg0: i32, %arg1: i32, %arg2: i32, %arg3: i32) -> (i32, i32, i32, i32) {
    %c0_i32 = arith.constant 0 : i32
    %c0_i32_0 = arith.constant 0 : i32
    return %arg0, %arg1, %arg2, %c0_i32 : i32, i32, i32, i32
  }
  func.func @transform_1(%arg0: i32, %arg1: i32, %arg2: i32, %arg3: i32) -> (i32, i32, i32, i32) {
    %c0_i32 = arith.constant 0 : i32
    %c0_i32_0 = arith.constant 0 : i32
    return %arg0, %arg1, %arg3, %c0_i32 : i32, i32, i32, i32
  }
  func.func @transform_2(%arg0: i32, %arg1: i32, %arg2: i32, %arg3: i32) -> (i32, i32, i32, i32) {
    %c0_i32 = arith.constant 0 : i32
    %c0_i32_0 = arith.constant 0 : i32
    return %arg0, %arg1, %arg3, %c0_i32 : i32, i32, i32, i32
  }
  func.func @transform_3(%arg0: i32, %arg1: i32, %arg2: i32, %arg3: i32) -> (i32, i32, i32, i32) {
    %c0_i32 = arith.constant 0 : i32
    %c0_i32_0 = arith.constant 0 : i32
    return %arg0, %c0_i32, %arg2, %arg3 : i32, i32, i32, i32
  }
  func.func @transform_4(%arg0: i32, %arg1: i32, %arg2: i32, %arg3: i32) -> (i32, i32, i32, i32) {
    %c0_i32 = arith.constant 0 : i32
    %c0_i32_0 = arith.constant 0 : i32
    return %arg0, %arg1, %arg2, %c0_i32 : i32, i32, i32, i32
  }
  func.func @transform_5(%arg0: i32, %arg1: i32, %arg2: i32, %arg3: i32) -> (i32, i32, i32, i32) {
    %c0_i32 = arith.constant 0 : i32
    return %arg0, %arg1, %arg2, %arg3 : i32, i32, i32, i32
  }
}

</mosaic_0001>

<bundles_post_ra>
// kernel: tpu_custom_call.1
= control target key start
LH: loop header
LB: loop body
LE: loop exit
PB: predicated region body
PF: predicated region fallthrough
CT: control target
= control target key end

     0   :  { %s1853_s0 = inlined_call_operand.hbm [shape: bf16[2,4,8,32], index: 0, kind: input, shape index: {}]   ;;  %s1854_s1 = inlined_call_operand.hbm [shape: bf16[2,4,8,32], index: 1, kind: input, shape index: {}]   ;;  %s1855_s2 = inlined_call_operand.hbm [shape: bf16[2,4,8,32], index: 2, kind: input, shape index: {}]   ;;  %s1856_s3 = inlined_call_operand.hbm [shape: f32[2,1,8,8], index: 3, kind: input, shape index: {}]   ;;  %s1857_s4 = inlined_call_operand.hbm [shape: f32[2,4,8,32], index: 4, kind: output, shape index: {0}]   ;;  %s1858_s5 = inlined_call_operand.hbm [shape: f32[2,4,8,8], index: 5, kind: output, shape index: {1}]  }
   0x1   :  { %1866 = sst [smem:[#allocation27_spill]] %s1853_s0 }
   0x2   :  { %1867 = sst [smem:[#allocation28_spill]] %s1854_s1 }
   0x3   :  { %1868 = sst [smem:[#allocation29_spill]] %s1857_s4 }
   0x4   :  { %11 = vsyncpa [#allocation6], 0 }
   0x5   :  { %13 = vsyncpa [#allocation6 + $0x1], 0 }
   0x6   :  { %14 = vsyncpa [#allocation9], 0 }
   0x7   :  { %16 = vsyncpa [#allocation9 + $0x1], 0 }
   0x8   :  { %17 = vsyncpa [#allocation12], 0 }
   0x9   :  { %19 = vsyncpa [#allocation12 + $0x1], 0 }
   0xa   :  { %20 = vsyncpa [#allocation7], 0 }
   0xb   :  { %22 = vsyncpa [#allocation7 + $0x1], 0 }
   0xc   :  { %23 = vsyncpa [#allocation15], 0 }
   0xd   :  { %25 = vsyncpa [#allocation15 + $0x1], 0  ;;  %s1517_s18 = smov 0   ;;  %s1519_s19 = smov 0  }
   0xe   :  { %s1521_s20 = smov 0   ;;  %s1523_s21 = smov 0  }
   0xf   :  { %s1525_s22 = smov 0   ;;  %s1527_s23 = smov 0  }
  0x10 LB: > { %1869 = sst [smem:[#allocation21_spill]] %s1458_s18  ;;  %s1548_s24 = sadd.s32 4294967295, %s1478_s23   ;;  %s1478_s23 = sphi %s1527_s23, %s31_s23   ;;  %s1474_s22 = sphi %s1525_s22, %s1893_s22   ;;  %s1470_s21 = sphi %s1523_s21, %s1892_s21   ;;  %s1466_s20 = sphi %s1521_s20, %s1888_s20   ;;  %s1462_s19 = sphi %s1519_s19, %s1891_s19   ;;  %s1458_s18 = sphi %s1517_s18, %s1890_s18  }
  0x11   : > { %1870 = sst [smem:[#allocation22_spill]] %s1466_s20  ;;  %s1078_s25 = sadd.s32 4294967294, %s1478_s23  }
  0x12   : > { %1871 = sst [smem:[#allocation23_spill]] %s1478_s23  ;;  %s57_s26 = sadd.s32 1, %s1474_s22 }
  0x13   : > { %s68_s27 = sadd.s32 1, %s1466_s20  ;;  %p59_p0 = scmp.ge.s32.totalorder %s57_s26, 2 }
  0x14   : > { %p75_p1 = scmp.ne.s32.totalorder %s1466_s20, %s1462_s19  ;;  %p76_p2 = scmp.eq.s32.totalorder %s1478_s23, 0 }
  0x15   : > { %p81_p3 = scmp.ne.s32.totalorder %s1462_s19, %s1458_s18  ;;  %s1895_s26 = smov (%p59_p0, %s57_s26), 0 }
  0x16   : > { %1872 = sst [smem:[#allocation24_spill]] %s1895_s26  ;;  %p1560_p4 = por %p76_p2, %p75_p1 }
  0x17   : > { %p82_p5 = scmp.eq.s32.totalorder %s1548_s24, 0  ;;  %s61_s29 = ssub.s32 %s1474_s22, %s1895_s26 }
  0x18   : > { %p199_p6 = scmp.eq.s32.totalorder %s1548_s24, 1  ;;  %p66_p7 = scmp.eq.s32.totalorder %s61_s29, 0 }
  0x19   : > { %p1568_p8 = por %p82_p5, %p81_p3  ;;  %p205_p10 = scmp.eq.s32.totalorder %s1078_s25, 1 }
  0x1a   : > { %p1572_p9 = por %p199_p6, %p75_p1  ;;  %p1080_p12 = scmp.ge.s32.totalorder %s1478_s23, 2 }
  0x1b   : > { %s1577_s7 = scalar_select %p66_p7, %s1466_s20, %s68_s27  }
  0x1c   : > { %p1579_p11 = por %p205_p10, %p81_p3  ;;  %p1152_p13 = scmp.lt.s32.totalorder %s1478_s23, 2 }
  0x1d   : > { %1876 = sst [smem:[#allocation25_spill]] %s1577_s7  ;;  %s1586_s9 = sand.u32 1, %s1466_s20  }
  0x1e   : > { %s1877_s8 = scalar_select %p1579_p11, 1, 0 }
  0x1f   : > { %s1589_s10 = sshll.u32 %s1586_s9, 4  ;;  %s1115_s11 = sshll.u32 %s1474_s22, 4 }
  0x20   : > { %1878 = sst [smem:[#allocation26_spill]] %s1877_s8  ;;  %p1594_p0 = pnand %p1152_p13, %p1560_p4 }
  0x21   : > { %s282_s13 = sand.u32 1, %s1478_s23   ;;  %s1880_s1 = sld [smem:[#allocation28_spill]] }
  0x22   : > { %s286_s25 = scalar_lea.vmem [#allocation8], %s1589_s10  ;;  %s283_s29 = scalar_lea.sflag [#allocation9], %s282_s13 }
  0x23   : > { %s297_s27 = sshll.u32 %s286_s25, 4  ;;  %s1480_s28 = smov 64   ;;  %s298_s27 = int_to_ptr.vmem [resolvable:$true] %s297_s27 }
  0x24   : > { %s1481_s26 = smov 4   ;;  %p1092_p1 = scmp.ge.s32.totalorder %s1478_s23, 1 }
  0x25   : > { %p351_p2 = scmp.lt.s32.totalorder %s1478_s23, 3  ;;  %s1882_s0 = sld [smem:[#allocation27_spill]] }
  0x26   : > { %s261_s13 = scalar_lea.vmem [#allocation5], %s1589_s10  ;;  %s258_s20 = scalar_lea.sflag [#allocation6], %s1586_s9 }
  0x27   : > { %s294_s16 = scalar_lea.hbm %s1880_s1, %s1115_s11  ;;  %p1607_p3 = pnand %p1092_p1, %p351_p2 }
  0x28   : > { %s295_s17 = sshll.u32 %s294_s16, 4  ;;  %s272_s7 = sshll.u32 %s261_s13, 4  ;;  %s296_s17 = int_to_ptr.hbm [resolvable:$true] %s295_s17  ;;  %s273_s7 = int_to_ptr.vmem [resolvable:$true] %s272_s7 }
  0x29   : > { %1138 = dma.hbm_to_vmem [thread:$0]  (!%p1594_p0), %s296_s17, 256, %s298_s27, %s283_s29, %s1480_s28, %s1480_s28, %s1481_s26  }
  0x2a   : > { %s319_s23 = scalar_lea.hbm %s1855_s2, %s1115_s11  ;;  %s311_s18 = scalar_lea.vmem [#allocation10], %s1589_s10 }
  0x2b   : > { %s269_s25 = scalar_lea.hbm %s1882_s0, %s1115_s11  ;;  %s320_s8 = sshll.u32 %s319_s23, 4  ;;  %s321_s8 = int_to_ptr.hbm [resolvable:$true] %s320_s8 }
  0x2c   : > { %s270_s1 = sshll.u32 %s269_s25, 4  ;;  %s322_s15 = sshll.u32 %s311_s18, 4  ;;  %s271_s1 = int_to_ptr.hbm [resolvable:$true] %s270_s1  ;;  %s323_s15 = int_to_ptr.vmem [resolvable:$true] %s322_s15 }
  0x2d   : > { %1135 = dma.hbm_to_vmem [thread:$0]  (!%p1594_p0), %s271_s1, 256, %s273_s7, %s258_s20, %s1480_s28, %s1480_s28, %s1481_s26  }
  0x2e   : > { %1141 = dma.hbm_to_vmem [thread:$0]  (!%p1594_p0), %s321_s8, 256, %s323_s15, %s283_s29, %s1480_s28, %s1480_s28, %s1481_s26  }
  0x2f   : > { %s1090_s16 = sshll.u32 %s1586_s9, 3  ;;  %s1091_s25 = sshll.u32 %s1474_s22, 3 }
  0x30   : > { %s342_s4 = scalar_lea.hbm %s1856_s3, %s1091_s25  ;;  %s336_s1 = scalar_lea.vmem [#allocation11], %s1090_s16 }
  0x31   : > { %s346_s20 = sshll.u32 %s336_s1, 4  ;;  %s344_s7 = sshll.u32 %s342_s4, 4  ;;  %s347_s20 = int_to_ptr.vmem [resolvable:$true] %s346_s20  ;;  %s345_s7 = int_to_ptr.hbm [resolvable:$true] %s344_s7 }
  0x32   : > { %s333_s11 = scalar_lea.sflag [#allocation12], %s1586_s9  ;;  %355 = sbr.rel (%p1607_p3) target bundleno = 749 (0x2ed), region = 36 }
  0x33   : > { %1144 = dma.hbm_to_vmem [thread:$0]  (!%p1594_p0), %s345_s7, 128, %s347_s20, %s333_s11  }
  0x34   : > { %s1635_s18 = sand.u32 (!%p1607_p3), 1, %s1462_s19  }
  0x35   : > { %s1093_s23 = sshll.u32 (!%p1607_p3), %s1635_s18, 4  ;;  %s358_s0 = scalar_lea.sflag (!%p1607_p3), [#allocation6], %s1635_s18 }
  0x36   : > { %s361_s26 = scalar_lea.vmem (!%p1607_p3), [#allocation5], %s1093_s23 }
  0x37   : > { %1437 = dma.done.wait (%p1568_p8), %s358_s0, 256  }
  0x38   : > { %1439 = vsyncadd (%p1568_p8), %s358_s0, 4294967040  ;;  %s367_s4 = sand.u32 1, %s1548_s24   ;;  %s371_s9 = scalar_lea.vmem [#allocation8], %s1093_s23 }
  0x39   : > { %s368_s8 = scalar_lea.sflag [#allocation9], %s367_s4 }
  0x3a   : > { %1441 = dma.done.wait (%p1568_p8), %s368_s8, 512  }
  0x3b   : > { %1443 = vsyncadd (%p1568_p8), %s368_s8, 4294966784  ;;  %s1096_s10 = sshll.u32 %s1635_s18, 3  ;;  %s1649_s12 = scalar_lea.vmem [#allocation10], %s1093_s23 }
  0x3c   : > { %s388_s29 = scalar_lea.sflag [#allocation12], %s1635_s18  ;;  %s1652_s28 = scalar_lea.vmem [#allocation11], %s1096_s10 }
  0x3d   : > { %1445 = dma.done.wait (%p1568_p8), %s388_s29, 128  }
  0x3e   : > { %1447 = vsyncadd (%p1568_p8), %s388_s29, 4294967168  ;;  %vm458_vm0 = vcmask 261120   ;;  %v467_v0 = vld [vmem:[%s371_s9] sm:$0xf]  ;;  %v469_v1 = vld [vmem:[%s371_s9 + $0x8] sm:$0xf] }
  0x3f   : > { %v476_v2 = vsel %vm458_vm0, %v467_v0, 0  ;;  %v514_v3 = vsel %vm458_vm0, %v469_v1, 0  ;;  %v468_v4 = vld [vmem:[%s371_s9 + $0x4] sm:$0xf]  ;;  %v470_v6 = vld [vmem:[%s371_s9 + $0xc] sm:$0xf] }
  0x40   : > { %485 = vmatpush.bf16.xpose.msra.mxu0 %v476_v2  ;;  %523 = vmatpush.bf16.xpose.msra.mxu2 %v514_v3  ;;  %v495_v5 = vsel %vm458_vm0, %v468_v4, 0  ;;  %v533_v7 = vsel %vm458_vm0, %v470_v6, 0  ;;  %v463_v8 = vld [vmem:[%s361_s26] sm:$0xf]  ;;  %v465_v9 = vld [vmem:[%s361_s26 + $0x8] sm:$0xf] }
  0x41   : > { %504 = vmatpush.bf16.xpose.msra.mxu1 %v495_v5  ;;  %542 = vmatpush.bf16.xpose.msra.mxu3 %v533_v7  ;;  %v464_v10 = vld [vmem:[%s361_s26 + $0x4] sm:$0xf]  ;;  %v466_v11 = vld [vmem:[%s361_s26 + $0xc] sm:$0xf]  ;;  %vm449_vm1 = vcmask 7168   ;;  %v1482_v12 = vmov -inf  }
  0x42   : > { %450 = vst.msk [vmem:[#allocation2] sm:$0xff] %vm449_vm1, %v1482_v12  ;;  %s1097_s24 = sshll.u32 %s1635_s18, 5  ;;  %v552_v14 = vld [vmem:[%s1652_s28] sm:$0xff]  ;;  %vm557_vm2 = vcmask 64512   ;;  %v1483_v34 = vmov 0   ;;  %v1484_v35 = vmov 0.0  }
  0x43   : > { %451 = vst.msk [vmem:[#allocation2 + $0x8] sm:$0xff] %vm449_vm1, %v1482_v12  ;;  %s1678_s30 = scalar_lea.vmem [#allocation14], %s1097_s24  ;;  %1210 = vset.pattern.permute.xlu0 %v1483_v34  ;;  %1209 = vset.pattern.permute.xlu2 %v1483_v34  ;;  %v689_v52 = vld [vmem:[%s1649_s12 + $0x8] sm:$0xf]  ;;  %vm694_vm3 = vcmask 1043456   ;;  %s1118_s17 = sshll.u32 %s1470_s21, 5 }
  0x44   : > { %452 = vst.msk [vmem:[#allocation2 + $0x10] sm:$0xff] %vm449_vm1, %v1482_v12  ;;  %1211 = vset.pattern.permute.xlu1 %v1483_v34  ;;  %v734_v53 = vsel %vm694_vm3, %v689_v52, 0  ;;  %v690_v54 = vld [vmem:[%s1649_s12 + $0xc] sm:$0xf]  ;;  %v687_v56 = vld [vmem:[%s1649_s12] sm:$0xf]  ;;  %s864_s16 = scalar_lea.hbm %s1858_s5, %s1118_s17 }
  0x45   : > { %453 = vst.msk [vmem:[#allocation2 + $0x18] sm:$0xff] %vm449_vm1, %v1482_v12  ;;  %v753_v55 = vsel %vm694_vm3, %v690_v54, 0  ;;  %v696_v57 = vsel %vm694_vm3, %v687_v56, 0  ;;  %v688_v59 = vld [vmem:[%s1649_s12 + $0x4] sm:$0xf]  ;;  %s865_s14 = sshll.u32 %s1678_s30, 4  ;;  %s866_s14 = int_to_ptr.vmem [resolvable:$true] %s865_s14 }
  0x46   : > { %456 = vst.msk [vmem:[#allocation3 + $0x10] sm:$0xff] %vm449_vm1, %v1484_v35  ;;  %v715_v61 = vsel %vm694_vm3, %v688_v59, 0  ;;  %s867_s25 = sshll.u32 %s864_s16, 4  ;;  %s829_s13 = scalar_lea.sflag [#allocation15], %s1635_s18  ;;  %s868_s25 = int_to_ptr.hbm [resolvable:$true] %s867_s25 }
  0x47   : > { %1099 = vmatmul.msk.bf16.vlgmr.msra.gmra.mxu0 %vm458_vm0, %v463_v8  ;;  %1101 = vmatmul.msk.bf16.vlgmr.msra.gmra.mxu2 %vm458_vm0, %v465_v9  ;;  %454 = vst.msk [vmem:[#allocation3] sm:$0xff] %vm449_vm1, %v1484_v35  ;;  %s1370_s1 = sshra.s32 %s868_s25, 4  ;;  %s1376_s23 = scalar_lea.hbm %s1858_s5, 64  ;;  %s1371_s1 = int_to_ptr.hbm [resolvable:$true] %s1370_s1 }
  0x48   : > { %1100 = vmatmul.msk.bf16.vlgmr.msra.gmra.mxu1 %vm458_vm0, %v464_v10  ;;  %1102 = vmatmul.msk.bf16.vlgmr.msra.gmra.mxu3 %vm458_vm0, %v466_v11  ;;  %455 = vst.msk [vmem:[#allocation3 + $0x8] sm:$0xff] %vm449_vm1, %v1484_v35  ;;  %s1372_s20 = scalar_lea.hbm %s1371_s1, 32  ;;  %p1377_p7 = scmp.lt.s32.totalorder %s1371_s1, %s1858_s5 }
  0x49   : > { %457 = vst.msk [vmem:[#allocation3 + $0x18] sm:$0xff] %vm449_vm1, %v1484_v35  ;;  %v1712_v36 = vld [vmem:[#allocation2] sm:$0xff]  ;;  %743 = vmatpush.bf16.msrb.mxu2 %v734_v53  ;;  %762 = vmatpush.bf16.msrb.mxu3 %v753_v55  ;;  %p1373_p4 = scmp.ne.s32.totalorder %s1371_s1, %s1372_s20  ;;  %p1378_p8 = scmp.lt.s32.totalorder %s1376_s23, %s1372_s20 }
  0x4a   : > { %459 = vst.msk [vmem:[#allocation4] sm:$0xff] %vm458_vm0, %v1484_v35  ;;  %v1724_v42 = vld [vmem:[#allocation2 + $0x8] sm:$0xff]  ;;  %705 = vmatpush.bf16.msrb.mxu0 %v696_v57  ;;  %724 = vmatpush.bf16.msrb.mxu1 %v715_v61 }
  0x4b   : > { %460 = vst.msk [vmem:[#allocation4 + $0x8] sm:$0xff] %vm458_vm0, %v1484_v35  ;;  %v1722_v40 = vld [vmem:[#allocation2 + $0x10] sm:$0xff]  ;;  %p1374_p5 = pnand %p1373_p4, %p1572_p9  ;;  %p1379_p10 = por %p1378_p8, %p1377_p7 }
  0x4c   : > { %461 = vst.msk [vmem:[#allocation4 + $0x10] sm:$0xff] %vm458_vm0, %v1484_v35  ;;  %v1737_v48 = vld [vmem:[#allocation2 + $0x18] sm:$0xff] }
  0x4d   : > { %462 = vst.msk [vmem:[#allocation4 + $0x18] sm:$0xff] %vm458_vm0, %v1484_v35  ;;  %p1375_p6 = pneg %p1374_p5 }
  0x4f   : > { %p1380_p13 = pnand %p1379_p10, %p1375_p6 }
  0xc4   : > { %v487_v13 = vpop.f32.mrf.mxu0 }
  0xc5   : > { %v548_v15 = vmul.f32 0.17677669, %v487_v13  ;;  %v506_v16 = vpop.f32.mrf.mxu1 }
  0xc6   : > { %v549_v17 = vmul.f32 0.17677669, %v506_v16 }
  0xc7   : > { %v1672_v18 = vadd.f32 %v552_v14, %v548_v15 }
  0xc8   : > { %v1674_v19 = vadd.f32 %v552_v14, %v549_v17 }
  0xc9   : > { %558 = vst.msk [vmem:[%s1678_s30] sm:$0xff] %vm557_vm2, %v1672_v18  ;;  %v566_v20 = vsel %vm557_vm2, %v1672_v18, -inf }
  0xca   : > { %v525_v21 = vpop.f32.mrf.mxu2  ;;  %567 = vmax.xlane.f32.xlu1 %v566_v20  ;;  %559 = vst.msk [vmem:[%s1678_s30 + $0x8] sm:$0xff] %vm557_vm2, %v1674_v19  ;;  %v569_v30 = vsel %vm557_vm2, %v1674_v19, -inf }
  0xcb   : > { %v550_v22 = vmul.f32 0.17677669, %v525_v21  ;;  %v544_v24 = vpop.f32.mrf.mxu3 }
  0xcc   : > { %v489_v23 = vpop.f32.mrf.mxu0  ;;  %v551_v26 = vmul.f32 0.17677669, %v544_v24 }
  0xcd   : > { %v1688_v25 = vadd.f32 %v552_v14, %v550_v22  ;;  %v508_v27 = vpop.f32.mrf.mxu1 }
  0xce   : > { %v1695_v29 = vadd.f32 %v552_v14, %v551_v26  ;;  %v628_v27 = vld [vmem:[#allocation3 + $0x10] sm:$0xff] }
  0xcf   : > { %560 = vst.msk [vmem:[%s1678_s30 + $0x10] sm:$0xff] %vm557_vm2, %v1688_v25  ;;  %v572_v28 = vsel %vm557_vm2, %v1688_v25, -inf }
  0xd0   : > { %573 = vmax.xlane.f32.xlu0 %v572_v28  ;;  %561 = vst.msk [vmem:[%s1678_s30 + $0x18] sm:$0xff] %vm557_vm2, %v1695_v29  ;;  %v575_v33 = vsel %vm557_vm2, %v1695_v29, -inf }
  0xd2   : > { %570 = vmax.xlane.f32.xlu1 %v569_v30  ;;  %v527_v31 = vpop.f32.mrf.mxu2 }
  0xd3   : > { %v546_v32 = vpop.f32.mrf.mxu3 }
  0xd8   : > { %576 = vmax.xlane.f32.xlu0 %v575_v33  ;;  %v626_v33 = vld [vmem:[#allocation3] sm:$0xff] }
 0x13d   : > { %v568_v37 = vpop.xlane.xlu1 %567 }
 0x13e   : > { %v1715_v38 = vmax.f32 %v1712_v36, %v568_v37 }
 0x140   : > { %v582_v39 = vsub.f32 %v1712_v36, %v1715_v38  ;;  %776 = vst.msk [vmem:[#allocation2] sm:$0xff] %vm449_vm1, %v1715_v38  ;;  %596 = vperm.xlu0 %1210, %v1715_v38  }
 0x143   : > { %v574_v41 = vpop.xlane.xlu0 %573 }
 0x144   : > { %v1727_v43 = vmax.f32 %v1722_v40, %v574_v41 }
 0x145   : > { %v571_v44 = vpop.xlane.xlu1 %570 }
 0x146   : > { %v584_v45 = vsub.f32 %v1722_v40, %v1727_v43  ;;  %778 = vst.msk [vmem:[#allocation2 + $0x10] sm:$0xff] %vm449_vm1, %v1727_v43  ;;  %v579_v46 = vmax.f32 %v1724_v42, %v571_v44  ;;  %606 = vperm.xlu2 %1209, %v1727_v43   ;;  %v655_v40 = vld [vmem:[#allocation4] sm:$0xff] }
 0x148   : > { %v583_v47 = vsub.f32 %v1724_v42, %v579_v46  ;;  %777 = vst.msk [vmem:[#allocation2 + $0x8] sm:$0xff] %vm449_vm1, %v579_v46  ;;  %601 = vperm.xlu1 %1211, %v579_v46   ;;  %v590_v20 = vmul.f32 1.442695, %v584_v45 }
 0x14a   : > { %v588_v21 = vmul.f32 1.442695, %v583_v47 }
 0x14b   : > { %v577_v49 = vpop.xlane.xlu0 %576 }
 0x14c   : > { %v1740_v50 = vmax.f32 %v1737_v48, %v577_v49 }
 0x14e   : > { %v585_v51 = vsub.f32 %v1737_v48, %v1740_v50  ;;  %779 = vst.msk [vmem:[#allocation2 + $0x18] sm:$0xff] %vm449_vm1, %v1740_v50  ;;  %611 = vperm.xlu2 %1209, %v1740_v50  }
 0x150   : > { %v592_v26 = vmul.f32 1.442695, %v585_v51  ;;  %v657_v51 = vld [vmem:[#allocation4 + $0x10] sm:$0xff] }
 0x1a0   : > { %v607_v58 = vpop.permute.xlu2 %606 }
 0x1a1   : > { %v616_v60 = vsub.f32 %v1688_v25, %v607_v58 }
 0x1a3   : > { %v622_v62 = vmul.f32 1.442695, %v616_v60 }
 0x1a5   : > { %1212 = vpow2.f32 %v622_v62  ;;  %v656_v62 = vld [vmem:[#allocation4 + $0x8] sm:$0xff] }
 0x1a8   : > { %v612_v63 = vpop.permute.xlu2 %611 }
 0x1a9   : > { %v617_v0 = vsub.f32 %v1695_v29, %v612_v63 }
 0x1ab   : > { %v1213_v1 = vpop.eup %1212  ;;  %v624_v2 = vmul.f32 1.442695, %v617_v0 }
 0x1ac   : > { %v640_v3 = vsel %vm557_vm2, %v1213_v1, 0.0  ;;  %v685_v4 = vpack.c.bf16 %v1213_v1, %v1213_v1 }
 0x1ad   : > { %1214 = vpow2.f32 %v624_v2  ;;  %641 = vadd.xlane.f32.xlu0 %v640_v3 }
 0x1ae   : > { %1105 = vmatmul.msk.bf16.vlgmr.msrb.gmra.mxu2 %vm557_vm2, %v685_v4 }
 0x1b2   : > { %v597_v5 = vpop.permute.xlu0 %596 }
 0x1b3   : > { %v1215_v6 = vpop.eup %1214  ;;  %v614_v7 = vsub.f32 %v1672_v18, %v597_v5 }
 0x1b4   : > { %v686_v8 = vpack.c.bf16 %v1215_v6, %v1215_v6  ;;  %v643_v25 = vsel %vm557_vm2, %v1215_v6, 0.0 }
 0x1b5   : > { %v618_v9 = vmul.f32 1.442695, %v614_v7 }
 0x1b6   : > { %1106 = vmatmul.msk.bf16.vlgmr.msrb.gmra.mxu3 %vm557_vm2, %v686_v8 }
 0x1b7   : > { %1216 = vpow2.f32 %v618_v9 }
 0x1ba   : > { %v602_v10 = vpop.permute.xlu1 %601 }
 0x1bb   : > { %v615_v11 = vsub.f32 %v1674_v19, %v602_v10  ;;  %v586_v19 = vmul.f32 1.442695, %v582_v39  ;;  %v627_v39 = vld [vmem:[#allocation3 + $0x8] sm:$0xff] }
 0x1bd   : > { %v1217_v12 = vpop.eup %1216  ;;  %v620_v13 = vmul.f32 1.442695, %v615_v11 }
 0x1be   : > { %v634_v14 = vsel %vm557_vm2, %v1217_v12, 0.0  ;;  %v683_v15 = vpack.c.bf16 %v1217_v12, %v1217_v12 }
 0x1bf   : > { %1218 = vpow2.f32 %v620_v13  ;;  %635 = vadd.xlane.f32.xlu2 %v634_v14 }
 0x1c0   : > { %1103 = vmatmul.msk.bf16.vlgmr.msrb.gmra.mxu0 %vm557_vm2, %v683_v15  ;;  %1220 = vpow2.f32 %v586_v19 }
 0x1c1   : > { %1222 = vpow2.f32 %v590_v20 }
 0x1c2   : > { %1224 = vpow2.f32 %v588_v21 }
 0x1c3   : > { %1226 = vpow2.f32 %v592_v26 }
 0x1c5   : > { %v1219_v16 = vpop.eup %1218 }
 0x1c6   : > { %v637_v17 = vsel %vm557_vm2, %v1219_v16, 0.0  ;;  %v684_v18 = vpack.c.bf16 %v1219_v16, %v1219_v16  ;;  %v1221_v22 = vpop.eup %1220 }
 0x1c7   : > { %638 = vadd.xlane.f32.xlu1 %v637_v17  ;;  %v1223_v23 = vpop.eup %1222  ;;  %v630_v36 = vmul.f32 %v1221_v22, %v626_v33 }
 0x1c8   : > { %1104 = vmatmul.msk.bf16.vlgmr.msrb.gmra.mxu1 %vm557_vm2, %v684_v18  ;;  %v1225_v24 = vpop.eup %1224  ;;  %v632_v29 = vmul.f32 %v1223_v23, %v628_v27 }
 0x1c9   : > { %v1769_v28 = vpop.eup %1226  ;;  %v631_v43 = vmul.f32 %v1225_v24, %v627_v39 }
 0x1d7   : > { %661 = vperm.xlu2 %1209, %v1221_v22  }
 0x1df   : > { %671 = vperm.xlu2 %1209, %v1223_v23  }
 0x1e0   : > { %666 = vperm.xlu1 %1211, %v1225_v24  }
 0x208   : > { %644 = vadd.xlane.f32.xlu2 %v643_v25 }
 0x220   : > { %v642_v30 = vpop.xlane.xlu0 %641  ;;  %676 = vperm.xlu2 %1209, %v1769_v28  }
 0x221   : > { %v648_v31 = vadd.f32 %v642_v30, %v632_v29 }
 0x223   : > { %653 = vst.msk [vmem:[#allocation3 + $0x10] sm:$0xff] %vm449_vm1, %v648_v31 }
 0x22a   : > { %v785_v32 = vld [vmem:[#allocation3 + $0x10] sm:$0xff] }
 0x22b   : > { %1228 = vrcp.f32 %v785_v32 }
 0x231   : > { %v1229_v34 = vpop.eup %1228  ;;  %v745_v35 = vpop.f32.mrf.mxu2 }
 0x232   : > { %v636_v37 = vpop.xlane.xlu2 %635  ;;  %807 = vperm.xlu1 %1211, %v1229_v34  }
 0x233   : > { %v646_v38 = vadd.f32 %v636_v37, %v630_v36 }
 0x235   : > { %651 = vst.msk [vmem:[#allocation3] sm:$0xff] %vm449_vm1, %v646_v38 }
 0x239   : > { %v747_v41 = vpop.f32.mrf.mxu2  ;;  %v1774_v42 = vpop.f32.mrf.mxu3 }
 0x23a   : > { %v639_v44 = vpop.xlane.xlu1 %638  ;;  %v662_v45 = vpop.permute.xlu2 %661 }
 0x23b   : > { %v647_v46 = vadd.f32 %v639_v44, %v631_v43  ;;  %v679_v47 = vmul.f32 %v662_v45, %v655_v40 }
 0x23c   : > { %v783_v48 = vld [vmem:[#allocation3] sm:$0xff] }
 0x23d   : > { %652 = vst.msk [vmem:[#allocation3 + $0x8] sm:$0xff] %vm449_vm1, %v647_v46  ;;  %v707_v49 = vpop.f32.mrf.mxu0  ;;  %1230 = vrcp.f32 %v783_v48 }
 0x23e   : > { %v768_v50 = vadd.f32 %v707_v49, %v679_v47 }
 0x240   : > { %772 = vst.msk [vmem:[#allocation4] sm:$0xff] %vm458_vm0, %v768_v50 }
 0x241   : > { %v766_v52 = vpop.f32.mrf.mxu3 }
 0x242   : > { %v672_v53 = vpop.permute.xlu2 %671 }
 0x243   : > { %v1231_v54 = vpop.eup %1230  ;;  %v681_v55 = vmul.f32 %v672_v53, %v657_v51 }
 0x244   : > { %797 = vperm.xlu0 %1210, %v1231_v54   ;;  %v784_v56 = vld [vmem:[#allocation3 + $0x8] sm:$0xff] }
 0x245   : > { %v770_v57 = vadd.f32 %v745_v35, %v681_v55  ;;  %v709_v58 = vpop.f32.mrf.mxu0  ;;  %v726_v59 = vpop.f32.mrf.mxu1  ;;  %1232 = vrcp.f32 %v784_v56 }
 0x247   : > { %774 = vst.msk [vmem:[#allocation4 + $0x10] sm:$0xff] %vm458_vm0, %v770_v57 }
 0x24b   : > { %v1233_v60 = vpop.eup %1232 }
 0x24c   : > { %802 = vperm.xlu2 %1209, %v1233_v60  }
 0x24d   : > { %v728_v61 = vpop.f32.mrf.mxu1 }
 0x252   : > { %v667_v63 = vpop.permute.xlu1 %666 }
 0x253   : > { %v680_v0 = vmul.f32 %v667_v63, %v656_v62 }
 0x255   : > { %v769_v1 = vadd.f32 %v726_v59, %v680_v0 }
 0x257   : > { %773 = vst.msk [vmem:[#allocation4 + $0x8] sm:$0xff] %vm458_vm0, %v769_v1 }
 0x258   : > { %1383 = shalt.err (!%p1380_p13)
}
 0x259   : > { %s1485_s4 = smov 128   ;;  %s1486_s8 = smov 8   ;;  %v629_v2 = vld [vmem:[#allocation3 + $0x18] sm:$0xff]  ;;  %v793_v13 = vld [vmem:[#allocation4 + $0x10] sm:$0xff]  ;;  %v791_v18 = vld [vmem:[#allocation4] sm:$0xff] }
 0x25a   : > { %1129 = dma.vmem_to_hbm [thread:$0]  (%p1572_p9), %s866_s14, 512, %s868_s25, %s829_s13, %s1485_s4, %s1485_s4, %s1486_s8   ;;  %v633_v3 = vmul.f32 %v1769_v28, %v629_v2  ;;  %v658_v6 = vld [vmem:[#allocation4 + $0x18] sm:$0xff] }
 0x25b   : > { %s431_s9 = scalar_lea.vmem [#allocation13], %s1097_s24  ;;  %s1883_s29 = sld [smem:[#allocation29_spill]] }
 0x25c   : > { %s844_s30 = sshll.u32 %s431_s9, 4  ;;  %s824_s24 = scalar_lea.sflag [#allocation7], %s1635_s18  ;;  %s845_s30 = int_to_ptr.vmem [resolvable:$true] %s844_s30 }
 0x25e   : > { %v792_v15 = vld [vmem:[#allocation4 + $0x8] sm:$0xff] }
 0x261   : > { %s843_s28 = scalar_lea.hbm %s1883_s29, %s1118_s17  ;;  %s1404_s17 = scalar_lea.hbm %s1883_s29, 64 }
 0x262   : > { %s846_s14 = sshll.u32 %s843_s28, 4  ;;  %s847_s14 = int_to_ptr.hbm [resolvable:$true] %s846_s14 }
 0x263   : > { %s1398_s27 = sshra.s32 %s847_s14, 4  ;;  %s1399_s27 = int_to_ptr.hbm [resolvable:$true] %s1398_s27 }
 0x264   : > { %s1400_s15 = scalar_lea.hbm %s1399_s27, 32  ;;  %p1405_p3 = scmp.lt.s32.totalorder %s1399_s27, %s1883_s29 }
 0x265   : > { %p1401_p0 = scmp.ne.s32.totalorder %s1399_s27, %s1400_s15  ;;  %p1406_p4 = scmp.lt.s32.totalorder %s1404_s17, %s1400_s15 }
 0x267   : > { %p1402_p1 = pnand %p1401_p0, %p1572_p9  ;;  %p1407_p5 = por %p1406_p4, %p1405_p3 }
 0x269   : > { %p1403_p2 = pneg %p1402_p1 }
 0x26b   : > { %p1408_p6 = pnand %p1407_p5, %p1403_p2 }
 0x27b   : > { %v645_v4 = vpop.xlane.xlu2 %644 }
 0x27c   : > { %v649_v5 = vadd.f32 %v645_v4, %v633_v3 }
 0x27e   : > { %654 = vst.msk [vmem:[#allocation3 + $0x18] sm:$0xff] %vm449_vm1, %v649_v5 }
 0x283   : > { %v677_v7 = vpop.permute.xlu2 %676 }
 0x284   : > { %v682_v8 = vmul.f32 %v677_v7, %v658_v6 }
 0x285   : > { %v786_v9 = vld [vmem:[#allocation3 + $0x18] sm:$0xff] }
 0x286   : > { %v771_v10 = vadd.f32 %v1774_v42, %v682_v8  ;;  %1234 = vrcp.f32 %v786_v9 }
 0x288   : > { %775 = vst.msk [vmem:[#allocation4 + $0x18] sm:$0xff] %vm458_vm0, %v771_v10 }
 0x28c   : > { %v1235_v11 = vpop.eup %1234 }
 0x28d   : > { %812 = vperm.xlu2 %1209, %v1235_v11  }
 0x28f   : > { %v794_v21 = vld [vmem:[#allocation4 + $0x18] sm:$0xff] }
 0x2a4   : > { %v808_v12 = vpop.permute.xlu1 %807 }
 0x2a5   : > { %v817_v14 = vmul.f32 %v808_v12, %v793_v13 }
 0x2a6   : > { %v803_v16 = vpop.permute.xlu2 %802 }
 0x2a7   : > { %821 = vst.msk [vmem:[%s431_s9 + $0x10] sm:$0xff] %vm458_vm0, %v817_v14  ;;  %v816_v17 = vmul.f32 %v803_v16, %v792_v15 }
 0x2a9   : > { %820 = vst.msk [vmem:[%s431_s9 + $0x8] sm:$0xff] %vm458_vm0, %v816_v17 }
 0x2b6   : > { %v798_v19 = vpop.permute.xlu0 %797 }
 0x2b7   : > { %v815_v20 = vmul.f32 %v798_v19, %v791_v18 }
 0x2b9   : > { %819 = vst.msk [vmem:[%s431_s9] sm:$0xff] %vm458_vm0, %v815_v20 }
 0x2e7   : > { %v813_v22 = vpop.permute.xlu2 %812 }
 0x2e8   : > { %v818_v23 = vmul.f32 %v813_v22, %v794_v21 }
 0x2ea   : > { %822 = vst.msk [vmem:[%s431_s9 + $0x18] sm:$0xff] %vm458_vm0, %v818_v23 }
 0x2eb   : > { %1411 = shalt.err (!%p1408_p6)
}
 0x2ec   : > { %1128 = dma.vmem_to_hbm [thread:$0]  (%p1572_p9), %s845_s30, 512, %s847_s14, %s824_s24, %s1485_s4, %s1485_s4, %s1486_s8  }
 0x2ed PF: > { %s1884_s18 = sld [smem:[#allocation21_spill]]  ;;  %p1146_p7 = pnand %p1080_p12, %p1579_p11 }
 0x2ee   : > { %s1886_s20 = sld [smem:[#allocation23_spill]] }
 0x2ef   : > { %p1147_p8 = pneg %p1146_p7 }
 0x2f3   : > { %s882_s7 = sand.u32 1, %s1884_s18  }
 0x2f4   : > { %s883_s11 = scalar_lea.sflag [#allocation7], %s882_s7 }
 0x2f5   : > { %1449 = dma.done.wait (%p1147_p8), %s883_s11, 512  }
 0x2f6   : > { %1451 = vsyncadd (%p1147_p8), %s883_s11, 4294966784  ;;  %s893_s23 = scalar_lea.sflag [#allocation15], %s882_s7 }
 0x2f7   : > { %1453 = dma.done.wait (%p1147_p8), %s893_s23, 512  }
 0x2f8   : > { %1455 = vsyncadd (%p1147_p8), %s893_s23, 4294966784  ;;  %s31_s23 = sadd.s32 1, %s1886_s20   ;;  %s1887_s6 = sld [smem:[#allocation22_spill]] }
 0x2f9   : > { %p28_p10 = scmp.ge.s32.totalorder %s31_s23, 4   ;;  %s1888_s20 = sld [smem:[#allocation25_spill]] }
 0x2fa   : > { %s1889_s0 = sld [smem:[#allocation24_spill]]  ;;  %s1890_s18 = smov %s1462_s19 }
 0x2fb   : > { %s1892_s21 = smov %s1474_s22 }
 0x2fc   :  { %30 = sbr.rel (!%p28_p10) target bundleno = 16 (0x10), region = 143 }
 0x2fe   : > { %s1891_s19 = smov %s1887_s6 }
 0x300   : > { %s1893_s22 = smov %s1889_s0 }
 0x301   :  { %899 = vsyncpa [#allocation6], 1 }
 0x302   :  { %901 = vsyncpa [#allocation6 + $0x1], 1 }
 0x303   :  { %902 = vsyncpa [#allocation9], 1 }
 0x304   :  { %904 = vsyncpa [#allocation9 + $0x1], 1 }
 0x305   :  { %905 = vsyncpa [#allocation12], 1 }
 0x306   :  { %907 = vsyncpa [#allocation12 + $0x1], 1 }
 0x307   :  { %908 = vsyncpa [#allocation7], 1 }
 0x308   :  { %910 = vsyncpa [#allocation7 + $0x1], 1 }
 0x309   :  { %911 = vsyncpa [#allocation15], 1 }
 0x30a   :  { %913 = vsyncpa [#allocation15 + $0x1], 1 }

</bundles_post_ra>
